<compile_context>
chip_gen: v6e
topology: v6e:2x2x1
jax: 0.10.0
libtpu: 0.0.40
codegen_flags: <defaults>
</compile_context>

<pallas_src>
import functools

import jax
import jax.numpy as jnp
from jax import lax
from jax.experimental import pallas as pl
from jax.experimental.pallas import tpu as pltpu


BN_EPS = 1e-5  # PyTorch BatchNorm1d default


def hazard_kernel(x_ref, w1_ref, b1_ref, w2t_ref, b2_ref, o_ref, *, chunk, n_chunks):
    w1 = w1_ref[...]
    b1 = b1_ref[...]
    w2t = w2t_ref[...]
    b2 = b2_ref[...]

    # Static chunk loop: bounds the live range of the lane-padded h intermediate to
    # [chunk, H] and writes each chunk's output columns directly (static, 128-aligned
    # lane offsets -> unmasked stores). Each chunk's temporaries die at its store.
    for c in range(n_chunks):
        start = c * chunk

        # ---- Layer 1: Linear(D -> H) + bias + ReLU (MXU + VPU) --------------------
        xc = x_ref[pl.ds(start, chunk), :]                                   # [chunk, D]
        h = jnp.dot(xc, w1, preferred_element_type=jnp.float32)              # [chunk, H] f32
        h = jnp.maximum(h + b1, 0.0)

        # ---- Dropout (eval mode) == identity ---------------------------------------
        # TODO(synk): training-mode dropout (random masking + 1/(1-p) scaling) omitted;
        # this kernel implements the eval-mode forward pass.

        # ---- Layer 2 + folded eval-mode BatchNorm ----------------------------------
        # Contract over H with batch landing on the lane axis: [O,H] x [chunk,H] -> [O,chunk].
        out = lax.dot_general(
            w2t, h,
            dimension_numbers=(((1,), (1,)), ((), ())),
            preferred_element_type=jnp.float32,
        )                                                                     # [O, chunk]
        o_ref[:, pl.ds(start, chunk)] = jnp.clip(out + b2, -75.0, 75.0)


def _round_up(n, m):
    return ((n + m - 1) // m) * m


def hazard_regression_forward(x, params, *, block_b=16384, cast_inputs_to=None):
    """Eval-mode forward pass. x: [B, D]; returns [B, O] float32."""
    B, D = x.shape
    w1 = params["w1"]                                   # [D, H]
    H = w1.shape[1]
    w2 = params["w2"]                                   # [H, O]
    O = w2.shape[1]

    # ---- Fold eval-mode BatchNorm + output Linear into constants (wrapper-side) -----
    scale = params["gamma"] * lax.rsqrt(params["var"] + BN_EPS)         # [1, H]
    shift = params["beta"] - params["mean"] * scale                     # [1, H]
    w2_eff_t = (w2 * scale.reshape(H, 1)).T.astype(jnp.float32)         # [O, H]
    b2_eff = (shift @ w2).reshape(O, 1).astype(jnp.float32)             # [O, 1]
    b1_row = params["b1"].reshape(1, H).astype(jnp.float32)             # [1, H]

    # Optional bf16 activations/weights (halves x DMA bytes + VMEM); f32 accumulation.
    if cast_inputs_to is not None:
        x = x.astype(cast_inputs_to)
        w1 = w1.astype(cast_inputs_to)
    x_itemsize = jnp.dtype(x.dtype).itemsize

    # ---- Tile selection (lane-padding-aware VMEM budget, >= 2 grid steps when possible) ----
    tb = min(block_b, _round_up(B, 128))
    if B >= 256:
        # Keep at least 2 grid steps so the "parallel" axis can feed both v7x TensorCores.
        tb = min(tb, _round_up((B + 1) // 2, 128))
    chunk = 512 if tb >= 512 else _round_up(tb, 128)
    tb = _round_up(tb, chunk)
    # Per-row VMEM cost: x block (minor dim D lane-padded to 128, double-buffered)
    # + (O padded to 8 sublanes, TB) output slab (double-buffered). Chunk temps are ~const.
    per_row_bytes = 2 * 128 * x_itemsize + 2 * 8 * 4
    vmem_budget = 40 * 1024 * 1024                      # safe under v7x's 64 MiB/TC
    tb = min(tb, max(chunk, (vmem_budget // per_row_bytes) // chunk * chunk))
    n_chunks = tb // chunk
    grid = (pl.cdiv(B, tb),)                            # no jnp.pad: boundary blocks masked

    vmem_needed = tb * per_row_bytes + (4 << 20)        # + weights / chunk temps / headroom
    vmem_limit = int(min(48 << 20, max(32 << 20, 2 * vmem_needed)))

    kernel = functools.partial(hazard_kernel, chunk=chunk, n_chunks=n_chunks)

    flops = int(2 * B * D * H + 2 * B * H * O)
    bytes_accessed = int(B * D * x_itemsize + B * O * 4
                         + D * H * x_itemsize + (H + O * H + O) * 4)

    out_t = pl.pallas_call(
        kernel,
        out_shape=jax.ShapeDtypeStruct((O, B), jnp.float32),
        grid=grid,
        in_specs=[
            pl.BlockSpec((tb, D), lambda i: (i, 0)),    # x tile (auto double-buffered)
            pl.BlockSpec((D, H), lambda i: (0, 0)),     # W1: VMEM-resident
            pl.BlockSpec((1, H), lambda i: (0, 0)),     # b1: VMEM-resident
            pl.BlockSpec((O, H), lambda i: (0, 0)),     # folded BN*W2 (transposed)
            pl.BlockSpec((O, 1), lambda i: (0, 0)),     # folded output bias
        ],
        out_specs=pl.BlockSpec((O, tb), lambda i: (0, i)),   # lane-dense output slab
        compiler_params=pltpu.CompilerParams(
            dimension_semantics=("parallel",),           # v7x: batch tiles over both TCs
            vmem_limit_bytes=vmem_limit,
        ),
        cost_estimate=pl.CostEstimate(
            flops=flops, transcendentals=0, bytes_accessed=bytes_accessed),
    )(x, w1, b1_row, w2_eff_t, b2_eff)

    # Wrapper-side layout plumbing only: (O, B) -> (B, O).
    return out_t.T


def init_params(key, input_dimension, hidden_layer_size=32, output_size=1):
    """Deterministic synthetic parameters matching the module's shapes
    (hidden_layers=1 default config)."""
    H = hidden_layer_size // 1  # next_size for layer 0
    k1, k2, k3, k4 = jax.random.split(key, 4)
    bound1 = 1.0 / jnp.sqrt(input_dimension)
    w1 = jax.random.uniform(k1, (input_dimension, H), jnp.float32, -bound1, bound1)
    b1 = jax.random.uniform(k2, (1, H), jnp.float32, -bound1, bound1)
    # BatchNorm1d(H): perturb gamma/beta so the BN path is actually exercised.
    gamma = jnp.ones((1, H), jnp.float32) + 0.1 * jax.random.normal(k3, (1, H))
    beta = 0.05 * jax.random.normal(k4, (1, H)).astype(jnp.float32)
    mean = jnp.zeros((1, H), jnp.float32)
    var = jnp.ones((1, H), jnp.float32)
    bound2 = 1.0 / jnp.sqrt(H)
    w2 = jax.random.uniform(jax.random.fold_in(key, 99),
                            (H, output_size), jnp.float32, -bound2, bound2)
    return {"w1": w1, "b1": b1, "gamma": gamma, "beta": beta,
            "mean": mean, "var": var, "w2": w2}


def reference_forward(x, p):
    """Pure-JAX reference of the same eval-mode forward pass (unfused BN)."""
    h = jnp.maximum(x @ p["w1"] + p["b1"], 0.0)
    h = (h - p["mean"]) * lax.rsqrt(p["var"] + BN_EPS) * p["gamma"] + p["beta"]
    return jnp.clip(h @ p["w2"], -75.0, 75.0)


if __name__ == "__main__":
    key = jax.random.PRNGKey(0)
    B, D = 500, 16                     # not a multiple of any tile -> exercises boundary masking
    kx, kp = jax.random.split(key)
    x = jax.random.normal(kx, (B, D), jnp.float32)
    params = init_params(kp, input_dimension=D, hidden_layer_size=32, output_size=1)

    ref = reference_forward(x, params)

    # (1) f32 path, small explicit tile: 4-step batch grid + partial (masked) final tile.
    out = jax.block_until_ready(hazard_regression_forward(x, params, block_b=128))
    assert out.shape == (B, 1), out.shape
    err = float(jnp.max(jnp.abs(out - ref)))
    assert jnp.allclose(out, ref, atol=1e-3, rtol=1e-3), f"f32 max abs err {err}"

    # (2) default performance config: auto-sized tile (>=2 grid steps) + bf16 input cast
    #     (halves x DMA bytes / VMEM); f32 accumulation retained -> looser tolerance.
    out_bf = jax.block_until_ready(
        hazard_regression_forward(x, params, cast_inputs_to=jnp.bfloat16))
    assert out_bf.shape == (B, 1), out_bf.shape
    err_bf = float(jnp.max(jnp.abs(out_bf - ref)))
    assert jnp.allclose(out_bf, ref, atol=5e-2, rtol=5e-2), f"bf16 max abs err {err_bf}"

    print("KERNEL_OK")
</pallas_src>

<mosaic_0001>
module attributes {stable_mosaic.version = 11 : i64} {
  func.func @hazard_kernel(%arg0: i32, %arg1: memref<128x16xf32, #tpu.memory_space<vmem>>, %arg2: memref<16x32xf32, #tpu.memory_space<vmem>>, %arg3: memref<1x32xf32, #tpu.memory_space<vmem>>, %arg4: memref<1x32xf32, #tpu.memory_space<vmem>>, %arg5: memref<1x1xf32, #tpu.memory_space<vmem>>, %arg6: memref<1x128xf32, #tpu.memory_space<vmem>>) attributes {dimension_semantics = [#tpu.dimension_semantics<parallel>], iteration_bounds = array<i64: 4>, scalar_prefetch = 0 : i64, scratch_operands = 0 : i64, tpu.core_type = #tpu.core_type<tc>, window_params = [{transform_indices = @transform_0, window_bounds = array<i64: 128, 16>}, {pipeline_mode = #tpu.pipeline_mode<synchronous>, transform_indices = @transform_1, window_bounds = array<i64: 16, 32>}, {pipeline_mode = #tpu.pipeline_mode<synchronous>, transform_indices = @transform_2, window_bounds = array<i64: 1, 32>}, {pipeline_mode = #tpu.pipeline_mode<synchronous>, transform_indices = @transform_3, window_bounds = array<i64: 1, 32>}, {pipeline_mode = #tpu.pipeline_mode<synchronous>, transform_indices = @transform_4, window_bounds = array<i64: 1, 1>}, {transform_indices = @transform_5, window_bounds = array<i64: 1, 128>}]} {
    %c0 = arith.constant 0 : index
    %c0_0 = arith.constant 0 : index
    %0 = vector.load %arg2[%c0, %c0_0] : memref<16x32xf32, #tpu.memory_space<vmem>>, vector<16x32xf32>
    %c0_1 = arith.constant 0 : index
    %c0_2 = arith.constant 0 : index
    %1 = vector.load %arg3[%c0_1, %c0_2] : memref<1x32xf32, #tpu.memory_space<vmem>>, vector<1x32xf32>
    %c0_3 = arith.constant 0 : index
    %c0_4 = arith.constant 0 : index
    %2 = vector.load %arg4[%c0_3, %c0_4] : memref<1x32xf32, #tpu.memory_space<vmem>>, vector<1x32xf32>
    %c0_5 = arith.constant 0 : index
    %c0_6 = arith.constant 0 : index
    %3 = vector.load %arg5[%c0_5, %c0_6] : memref<1x1xf32, #tpu.memory_space<vmem>>, vector<1x1xf32>
    %c0_7 = arith.constant 0 : index
    %c0_8 = arith.constant 0 : index
    %4 = vector.load %arg1[%c0_7, %c0_8] : memref<128x16xf32, #tpu.memory_space<vmem>>, vector<128x16xf32>
    %cst = arith.constant dense<0.000000e+00> : vector<128x32xf32>
    %5 = tpu.matmul %4, %0, %cst {dimension_numbers = #tpu.dot_dimension_numbers<[1], [0], [0], [1], [0, 0, 1, 1], [], []>} : vector<128x16xf32>, vector<16x32xf32>, vector<128x32xf32> -> vector<128x32xf32>
    %6 = vector.broadcast %1 : vector<1x32xf32> to vector<128x32xf32>
    %7 = arith.addf %5, %6 : vector<128x32xf32>
    %cst_9 = arith.constant 0.000000e+00 : f32
    %8 = vector.broadcast %cst_9 : f32 to vector<128x32xf32>
    %9 = arith.maximumf %7, %8 : vector<128x32xf32>
    %cst_10 = arith.constant dense<0.000000e+00> : vector<1x128xf32>
    %10 = tpu.matmul %2, %9, %cst_10 {dimension_numbers = #tpu.dot_dimension_numbers<[1], [1], [0], [0], [0, 0, 1, 0], [], []>} : vector<1x32xf32>, vector<128x32xf32>, vector<1x128xf32> -> vector<1x128xf32>
    %11 = vector.broadcast %3 : vector<1x1xf32> to vector<1x128xf32>
    %12 = arith.addf %10, %11 : vector<1x128xf32>
    %cst_11 = arith.constant -7.500000e+01 : f32
    %cst_12 = arith.constant 7.500000e+01 : f32
    %13 = vector.broadcast %cst_11 : f32 to vector<1x128xf32>
    %14 = arith.maximumf %13, %12 : vector<1x128xf32>
    %15 = vector.broadcast %cst_12 : f32 to vector<1x128xf32>
    %16 = arith.minimumf %15, %14 : vector<1x128xf32>
    %c0_13 = arith.constant 0 : index
    %c0_14 = arith.constant 0 : index
    %17 = vector.load %arg6[%c0_13, %c0_14] : memref<1x128xf32, #tpu.memory_space<vmem>>, vector<1x128xf32>
    tpu.vector_store %arg6[%c0_13, %c0_14], %16 {strides = array<i32>} : memref<1x128xf32, #tpu.memory_space<vmem>>, vector<1x128xf32>,
    return
  }
  func.func @transform_0(%arg0: i32) -> (i32, i32) {
    %c0_i32 = arith.constant 0 : i32
    %c0_i32_0 = arith.constant 0 : i32
    return %arg0, %c0_i32 : i32, i32
  }
  func.func @transform_1(%arg0: i32) -> (i32, i32) {
    %c0_i32 = arith.constant 0 : i32
    %c0_i32_0 = arith.constant 0 : i32
    %c0_i32_1 = arith.constant 0 : i32
    return %c0_i32, %c0_i32_0 : i32, i32
  }
  func.func @transform_2(%arg0: i32) -> (i32, i32) {
    %c0_i32 = arith.constant 0 : i32
    %c0_i32_0 = arith.constant 0 : i32
    %c0_i32_1 = arith.constant 0 : i32
    return %c0_i32, %c0_i32_0 : i32, i32
  }
  func.func @transform_3(%arg0: i32) -> (i32, i32) {
    %c0_i32 = arith.constant 0 : i32
    %c0_i32_0 = arith.constant 0 : i32
    %c0_i32_1 = arith.constant 0 : i32
    return %c0_i32, %c0_i32_0 : i32, i32
  }
  func.func @transform_4(%arg0: i32) -> (i32, i32) {
    %c0_i32 = arith.constant 0 : i32
    %c0_i32_0 = arith.constant 0 : i32
    %c0_i32_1 = arith.constant 0 : i32
    return %c0_i32, %c0_i32_0 : i32, i32
  }
  func.func @transform_5(%arg0: i32) -> (i32, i32) {
    %c0_i32 = arith.constant 0 : i32
    %c0_i32_0 = arith.constant 0 : i32
    return %c0_i32, %arg0 : i32, i32
  }
}

</mosaic_0001>

<bundles_post_ra>
// kernel: tpu_custom_call.1
= control target key start
LH: loop header
LB: loop body
LE: loop exit
PB: predicated region body
PF: predicated region fallthrough
CT: control target
= control target key end

     0   :  { %s1144_s0 = inlined_call_operand.vmem [shape: f32[500,16], index: 0, kind: input, shape index: {}]   ;;  %s1145_s1 = inlined_call_operand.vmem [shape: f32[16,32], index: 1, kind: input, shape index: {}]   ;;  %s1146_s2 = inlined_call_operand.vmem [shape: f32[1,32], index: 2, kind: input, shape index: {}]   ;;  %s1147_s3 = inlined_call_operand.vmem [shape: f32[1,32], index: 3, kind: input, shape index: {}]   ;;  %s1148_s4 = inlined_call_operand.<no memory space> [shape: f32[1,1], index: 4, kind: input, shape index: {}]   ;;  %s1149_s5 = inlined_call_operand.hbm [shape: f32[1,500], index: 5, kind: output, shape index: {}]  }
   0x1   :  { %v10_v0 = vstv %s1148_s4 }
   0x2   :  { %11 = vst [vmem:[#allocation2] sm:$0x1] %v10_v0 }
   0x3   :  { %12 = vsyncpa [#allocation4], 0 }
   0x4   :  { %14 = vsyncpa [#allocation4 + $0x1], 0  ;;  %s969_s20 = smov 0   ;;  %s971_s21 = smov 0  }
   0x5   :  { %s973_s22 = smov 0   ;;  %s975_s23 = smov 0  }
   0x6 LB: > { %s684_s4 = sadd.s32 4294967295, %s930_s23   ;;  %s685_s24 = sadd.s32 4294967294, %s930_s23   ;;  %s930_s23 = sphi %s975_s23, %s1155_s23   ;;  %s926_s22 = sphi %s973_s22, %s1154_s22   ;;  %s922_s21 = sphi %s971_s21, %s1153_s21   ;;  %s918_s20 = sphi %s969_s20, %s1152_s20  }
   0x7   : > { %s992_s25 = sadd.s32 1, %s930_s23   ;;  %s137_s26 = sadd.s32 1, %s926_s22 }
   0x8   : > { %s134_s27 = ssub.s32 %s930_s23, %s992_s25  ;;  %p147_p0 = scmp.ne.s32.totalorder %s926_s22, %s922_s21 }
   0x9   : > { %p135_p1 = scmp.eq.s32.totalorder %s134_s27, 0  ;;  %p148_p2 = scmp.eq.s32.totalorder %s684_s4, 3 }
   0xa   : > { %p153_p3 = scmp.ne.s32.totalorder %s922_s21, %s918_s20  ;;  %p154_p4 = scmp.eq.s32.totalorder %s685_s24, 3 }
   0xb   : > { %s1002_s28 = scalar_select %p135_p1, %s926_s22, %s137_s26  }
   0xc   : > { %p1004_p5 = por %p148_p2, %p147_p0  ;;  %p1008_p6 = por %p154_p4, %p153_p3 }
   0xd   : > { %p688_p7 = scmp.ge.s32.totalorder %s930_s23, 1  ;;  %p201_p8 = scmp.lt.s32.totalorder %s930_s23, 5 }
   0xf   : > { %p202_p9 = pnand %p688_p7, %p201_p8 }
  0x10   : > { %s1020_s10 = sshll.u32 (!%p202_p9), %s684_s4, 4  ;;  %s230_s4 = sand.u32 (!%p202_p9), 1, %s922_s21  }
  0x11   : > { %205 = sbr.rel (%p202_p9) target bundleno = 526 (0x20e), region = 40  ;;  %p237_p10 = scmp.lt.s32.totalorder (!%p202_p9), %s1020_s10, 62 }
  0x12   : > { %s231_s24 = scalar_lea.vmem (!%p202_p9), [#allocation3], %s230_s4  ;;  %s628_s7 = scalar_lea.hbm (!%p202_p9), %s1149_s5, %s1020_s10 }
  0x13   : > { %s630_s26 = sshll.u32 (!%p202_p9), %s231_s24, 4  ;;  %s618_s8 = scalar_lea.sflag (!%p202_p9), [#allocation4], %s230_s4  ;;  %s631_s26 = int_to_ptr.vmem [resolvable:$true] %s630_s26 }
  0x14   : > { %s870_s9 = scalar_lea.vmem (!%p202_p9), %s631_s26, 16 }
  0x15   : > { %p871_p11 = scmp.ne.s32.totalorder (!%p202_p9), %s631_s26, %s870_s9 }
  0x16   : > { %v247_v1 = vld [vmem:[%s1145_s1 + $0x8] sm:$0xff]  ;;  %v246_v2 = vld [vmem:[%s1145_s1] sm:$0xff]  ;;  %s238_s11 = scalar_select %p237_p10, %s1020_s10, 62  ;;  %vm273_vm0 = vcmask 130048   ;;  %v932_v19 = vmov 0.0   ;;  %vm933_vm1 = vmmov 0  }
  0x17   : > { %764 = vmatprep.subr.mxu0 %v247_v1  ;;  %792 = vmatprep.subr.mxu1 %v932_v19  ;;  %v250_v20 = vld [vmem:[#allocation2] sm:$0x1]  ;;  %v934_v21 = vmov 0   ;;  %vm492_vm2 = vcmask 261120   ;;  %p872_p12 = pnand %p871_p11, %p1004_p5 }
  0x18   : > { %765 = vmatpush3.msra.mxu0 %v247_v1  ;;  %s690_s12 = sshll.u32 %s238_s11, 3  ;;  %824 = vmatprep.mubr.msk.f32.mxu1 %vm933_vm1, %v932_v19  ;;  %v691_v36 = vld [vmem:[%s1146_s2] ss:$0 sm:$0xff]  ;;  %s935_s11 = smov [#allocation3]  }
  0x19   : > { %766 = vmatprep.subr.mxu0 %v246_v2  ;;  %s1027_s15 = scalar_lea.vmem %s1144_s0, %s690_s12  ;;  %869 = vset.pattern.permute.xlu0 %v934_v21  ;;  %p873_p13 = pneg %p872_p12 }
  0x1a   : > { %767 = vmatpush3.msra.mxu0 %v246_v2  ;;  %v251_v3 = vld [vmem:[%s1027_s15] sm:$0xff]  ;;  %v252_v4 = vld [vmem:[%s1027_s15 + $0x8] sm:$0xff]  ;;  %v253_v5 = vld [vmem:[%s1027_s15 + $0x10] sm:$0xff]  ;;  %485 = vperm.xlu0 %869, %v250_v20   ;;  %s874_s12 = sshll.u32 %s935_s11, 4  ;;  %s875_s12 = int_to_ptr.vmem [resolvable:$false] %s874_s12 }
  0x1b   : > { %768 = vmatprep.mubr.msk.f32.mxu0 %vm273_vm0, %v251_v3  ;;  %v254_v6 = vld [vmem:[%s1027_s15 + $0x18] sm:$0xff]  ;;  %v255_v7 = vld [vmem:[%s1027_s15 + $0x20] sm:$0xff]  ;;  %v256_v8 = vld [vmem:[%s1027_s15 + $0x28] sm:$0xff]  ;;  %s876_s13 = scalar_lea.vmem %s875_s12, 32  ;;  %p877_p0 = scmp.lt.s32.totalorder %s631_s26, %s875_s12 }
  0x1c   : > { %769 = vmatmul.mubr.msk.f32.vlgmr.msra.gmra.mxu0 %vm273_vm0, %v252_v4  ;;  %v257_v9 = vld [vmem:[%s1027_s15 + $0x30] sm:$0xff]  ;;  %v258_v10 = vld [vmem:[%s1027_s15 + $0x38] sm:$0xff]  ;;  %v259_v11 = vld [vmem:[%s1027_s15 + $0x40] sm:$0xff]  ;;  %p878_p1 = scmp.lt.s32.totalorder %s876_s13, %s870_s9 }
  0x1d   : > { %771 = vmatprep.mubr.msk.f32.mxu0 %vm273_vm0, %v253_v5  ;;  %v260_v12 = vld [vmem:[%s1027_s15 + $0x48] sm:$0xff]  ;;  %v261_v13 = vld [vmem:[%s1027_s15 + $0x50] sm:$0xff]  ;;  %v262_v14 = vld [vmem:[%s1027_s15 + $0x58] sm:$0xff] }
  0x1e   : > { %v263_v15 = vld [vmem:[%s1027_s15 + $0x60] sm:$0xff]  ;;  %v264_v16 = vld [vmem:[%s1027_s15 + $0x68] sm:$0xff]  ;;  %v265_v17 = vld [vmem:[%s1027_s15 + $0x70] sm:$0xff]  ;;  %p879_p2 = por %p878_p1, %p877_p0 }
  0x1f   : > { %v266_v18 = vld [vmem:[%s1027_s15 + $0x78] sm:$0xff] }
  0x20   : > { %772 = vmatmul.mubr.msk.f32.gmra.mxu0 %vm273_vm0, %v254_v6  ;;  %p880_p3 = pnand %p879_p2, %p873_p13 }
  0x21   : > { %774 = vmatprep.mubr.msk.f32.mxu0 %vm273_vm0, %v255_v7  ;;  %v249_v7 = vld [vmem:[%s1147_s3] sm:$0x1] }
  0x24   : > { %775 = vmatmul.mubr.msk.f32.gmra.mxu0 %vm273_vm0, %v256_v8  ;;  %v488_v8 = vlaneseq }
  0x25   : > { %777 = vmatprep.mubr.msk.f32.mxu0 %vm273_vm0, %v257_v9 }
  0x26   : > { %v489_v9 = vshrl.u32 %v488_v8, 7 }
  0x28   : > { %778 = vmatmul.mubr.msk.f32.gmra.mxu0 %vm273_vm0, %v258_v10  ;;  %v490_v10 = vsub.s32 0, %v489_v9 }
  0x29   : > { %780 = vmatprep.mubr.msk.f32.mxu0 %vm273_vm0, %v259_v11 }
  0x2c   : > { %781 = vmatmul.mubr.msk.f32.gmra.mxu0 %vm273_vm0, %v260_v12 }
  0x2d   : > { %783 = vmatprep.mubr.msk.f32.mxu0 %vm273_vm0, %v261_v13 }
  0x30   : > { %784 = vmatmul.mubr.msk.f32.gmra.mxu0 %vm273_vm0, %v262_v14 }
  0x31   : > { %786 = vmatprep.mubr.msk.f32.mxu0 %vm273_vm0, %v263_v15 }
  0x34   : > { %787 = vmatmul.mubr.msk.f32.gmra.mxu0 %vm273_vm0, %v264_v16 }
  0x35   : > { %789 = vmatprep.mubr.msk.f32.mxu0 %vm273_vm0, %v265_v17 }
  0x38   : > { %790 = vmatmul.mubr.msk.f32.gmra.mxu0 %vm273_vm0, %v266_v18 }
  0x95   : > { %v486_v11 = vpop.permute.xlu0 %485 }
  0x96   : > { %v491_v12 = vrot.slane %v486_v11, %v490_v10 }
  0xdc   : > { %v1063_v22 = vpop.f32.mrf.mxu0 }
  0xdd   : > { %v394_v2 = vadd.f32 %v1063_v22, %v691_v36 }
  0xde   : > { %v1065_v23 = vpop.f32.mrf.mxu0 }
  0xdf   : > { %v468_v4 = vmax.f32 %v394_v2, 0.0  ;;  %v389_v5 = vadd.f32 %v691_v36, %v1065_v23 }
  0xe0   : > { %v773_v24 = vpop.f32.mrf.mxu0 }
  0xe1   : > { %v404_v62 = vadd.f32 %v773_v24, %v691_v36  ;;  %v467_v6 = vmax.f32 %v389_v5, 0.0 }
  0xe2   : > { %v1067_v25 = vpop.f32.mrf.mxu0 }
  0xe3   : > { %v470_v0 = vmax.f32 %v404_v62, 0.0  ;;  %v399_v1 = vadd.f32 %v691_v36, %v1067_v25 }
  0xe4   : > { %v776_v26 = vpop.f32.mrf.mxu0 }
  0xe5   : > { %v414_v58 = vadd.f32 %v776_v26, %v691_v36  ;;  %v469_v3 = vmax.f32 %v399_v1, 0.0 }
  0xe6   : > { %v408_v27 = vpop.f32.mrf.mxu0 }
  0xe7   : > { %v472_v60 = vmax.f32 %v414_v58, 0.0  ;;  %v409_v61 = vadd.f32 %v691_v36, %v408_v27 }
  0xe8   : > { %v779_v28 = vpop.f32.mrf.mxu0 }
  0xe9   : > { %v424_v54 = vadd.f32 %v779_v28, %v691_v36  ;;  %v471_v63 = vmax.f32 %v409_v61, 0.0 }
  0xea   : > { %v418_v29 = vpop.f32.mrf.mxu0 }
  0xeb   : > { %v474_v56 = vmax.f32 %v424_v54, 0.0  ;;  %v419_v57 = vadd.f32 %v691_v36, %v418_v29 }
  0xec   : > { %v782_v30 = vpop.f32.mrf.mxu0 }
  0xed   : > { %v434_v50 = vadd.f32 %v782_v30, %v691_v36  ;;  %v473_v59 = vmax.f32 %v419_v57, 0.0 }
  0xee   : > { %v428_v31 = vpop.f32.mrf.mxu0 }
  0xef   : > { %v476_v52 = vmax.f32 %v434_v50, 0.0  ;;  %v429_v53 = vadd.f32 %v691_v36, %v428_v31 }
  0xf0   : > { %v785_v32 = vpop.f32.mrf.mxu0 }
  0xf1   : > { %v444_v46 = vadd.f32 %v785_v32, %v691_v36  ;;  %v475_v55 = vmax.f32 %v429_v53, 0.0 }
  0xf2   : > { %v438_v33 = vpop.f32.mrf.mxu0 }
  0xf3   : > { %v478_v48 = vmax.f32 %v444_v46, 0.0  ;;  %v439_v49 = vadd.f32 %v691_v36, %v438_v33 }
  0xf4   : > { %v788_v34 = vpop.f32.mrf.mxu0 }
  0xf5   : > { %v454_v42 = vadd.f32 %v788_v34, %v691_v36  ;;  %v477_v51 = vmax.f32 %v439_v49, 0.0 }
  0xf6   : > { %v448_v35 = vpop.f32.mrf.mxu0 }
  0xf7   : > { %v480_v44 = vmax.f32 %v454_v42, 0.0  ;;  %v449_v45 = vadd.f32 %v691_v36, %v448_v35 }
  0xf8   : > { %v791_v37 = vpop.f32.mrf.mxu0 }
  0xf9   : > { %v464_v38 = vadd.f32 %v791_v37, %v691_v36  ;;  %v479_v47 = vmax.f32 %v449_v45, 0.0 }
  0xfa   : > { %v458_v39 = vpop.f32.mrf.mxu0 }
  0xfb   : > { %v482_v40 = vmax.f32 %v464_v38, 0.0  ;;  %v459_v41 = vadd.f32 %v691_v36, %v458_v39 }
  0xfd   : > { %793 = vmatpush3.xpose.msk.msra.mxu1 %vm492_vm2, %v482_v40  ;;  %v481_v43 = vmax.f32 %v459_v41, 0.0 }
  0xfe   : > { %794 = vmatprep.subr.mxu1 %v932_v19 }
 0x101   : > { %795 = vmatpush3.xpose.msk.msra.mxu1 %vm492_vm2, %v481_v43 }
 0x102   : > { %796 = vmatprep.subr.mxu1 %v932_v19 }
 0x105   : > { %797 = vmatpush3.xpose.msk.msra.mxu1 %vm492_vm2, %v480_v44 }
 0x106   : > { %798 = vmatprep.subr.mxu1 %v932_v19 }
 0x109   : > { %799 = vmatpush3.xpose.msk.msra.mxu1 %vm492_vm2, %v479_v47 }
 0x10a   : > { %800 = vmatprep.subr.mxu1 %v932_v19 }
 0x10d   : > { %801 = vmatpush3.xpose.msk.msra.mxu1 %vm492_vm2, %v478_v48 }
 0x10e   : > { %802 = vmatprep.subr.mxu1 %v932_v19 }
 0x111   : > { %803 = vmatpush3.xpose.msk.msra.mxu1 %vm492_vm2, %v477_v51 }
 0x112   : > { %804 = vmatprep.subr.mxu1 %v932_v19 }
 0x115   : > { %805 = vmatpush3.xpose.msk.msra.mxu1 %vm492_vm2, %v476_v52 }
 0x116   : > { %806 = vmatprep.subr.mxu1 %v932_v19 }
 0x119   : > { %807 = vmatpush3.xpose.msk.msra.mxu1 %vm492_vm2, %v475_v55 }
 0x11a   : > { %808 = vmatprep.subr.mxu1 %v932_v19 }
 0x11d   : > { %809 = vmatpush3.xpose.msk.msra.mxu1 %vm492_vm2, %v474_v56 }
 0x11e   : > { %810 = vmatprep.subr.mxu1 %v932_v19 }
 0x121   : > { %811 = vmatpush3.xpose.msk.msra.mxu1 %vm492_vm2, %v473_v59 }
 0x122   : > { %812 = vmatprep.subr.mxu1 %v932_v19 }
 0x125   : > { %813 = vmatpush3.xpose.msk.msra.mxu1 %vm492_vm2, %v472_v60 }
 0x126   : > { %814 = vmatprep.subr.mxu1 %v932_v19 }
 0x129   : > { %815 = vmatpush3.xpose.msk.msra.mxu1 %vm492_vm2, %v471_v63 }
 0x12a   : > { %816 = vmatprep.subr.mxu1 %v932_v19 }
 0x12d   : > { %817 = vmatpush3.xpose.msk.msra.mxu1 %vm492_vm2, %v470_v0 }
 0x12e   : > { %818 = vmatprep.subr.mxu1 %v932_v19 }
 0x131   : > { %819 = vmatpush3.xpose.msk.msra.mxu1 %vm492_vm2, %v469_v3 }
 0x132   : > { %820 = vmatprep.subr.mxu1 %v932_v19 }
 0x135   : > { %821 = vmatpush3.xpose.msk.msra.mxu1 %vm492_vm2, %v468_v4 }
 0x136   : > { %822 = vmatprep.subr.mxu1 %v932_v19 }
 0x139   : > { %823 = vmatpush3.xpose.msk.msra.mxu1 %vm492_vm2, %v467_v6 }
 0x13c   : > { %825 = vmatmul.mubr.msk.f32.vlgmr.msra.gmra.mxu1 %vm492_vm2, %v249_v7 }
 0x1fc   : > { %v610_v13 = vpop.f32.mrf.mxu1 }
 0x1fd   : > { %v611_v14 = vadd.f32 %v610_v13, %v491_v12 }
 0x1fe   : > { %v826_v15 = vpop.f32.mrf.mxu1 }
 0x1ff   : > { %v725_v16 = vclamps-f32 %v611_v14, 75.0 }
 0x201   : > { %616 = vst [vmem:[%s231_s24] sm:$0x1] %v725_v16 }
 0x202   : > { %883 = shalt.err (!%p880_p3)
}
 0x203   : > { %s884_s14 = scalar_lea.hbm %s628_s7, 16  ;;  %s888_s16 = scalar_lea.hbm %s1149_s5, 64 }
 0x204   : > { %p885_p4 = scmp.ne.s32.totalorder %s628_s7, %s884_s14  ;;  %p889_p9 = scmp.lt.s32.totalorder %s628_s7, %s1149_s5 }
 0x205   : > { %p890_p10 = scmp.lt.s32.totalorder %s888_s16, %s884_s14 }
 0x206   : > { %p886_p7 = pnand %p885_p4, %p1004_p5 }
 0x207   : > { %p891_p11 = por %p890_p10, %p889_p9 }
 0x208   : > { %p887_p8 = pneg %p886_p7 }
 0x20a   : > { %p892_p12 = pnand %p891_p11, %p887_p8 }
 0x20c   : > { %895 = shalt.err (!%p892_p12)
}
 0x20d   : > { %827 = dma.vmem_to_hbm [thread:$0]  (%p1004_p5), %s631_s26, 16, %s628_s7, %s618_s8  }
 0x20e PF: > { %p833_p13 = scmp.ge.s32.totalorder %s930_s23, 2  ;;  %s642_s19 = sand.u32 1, %s918_s20  }
 0x20f   : > { %s643_s4 = scalar_lea.sflag [#allocation4], %s642_s19 }
 0x210   : > { %p830_p0 = pnand %p833_p13, %p1008_p6 }
 0x212   : > { %p831_p1 = pneg %p830_p0 }
 0x214   : > { %913 = dma.done.wait (%p831_p1), %s643_s4, 16  }
 0x215   : > { %915 = vsyncadd (%p831_p1), %s643_s4, 4294967280  ;;  %p17_p2 = scmp.ge.s32.totalorder %s992_s25, 6   ;;  %s1152_s20 = smov %s922_s21 }
 0x216   : > { %s1153_s21 = smov %s926_s22  ;;  %s1154_s22 = smov %s1002_s28 }
 0x217   : > { %s1155_s23 = smov %s992_s25  ;;  %19 = sbr.rel (!%p17_p2) target bundleno = 6 (0x6), region = 75 }
 0x21c   :  { %647 = vsyncpa [#allocation4], 1 }
 0x21d   :  { %649 = vsyncpa [#allocation4 + $0x1], 1 }

</bundles_post_ra>
